<compile_context>
chip_gen: v5e
topology: v5e:2x2
jax: 0.10.0
libtpu: 0.0.40
codegen_flags: <defaults>
</compile_context>

<pallas_src>
import functools

import jax
import jax.numpy as jnp
from jax import lax
from jax.experimental import pallas as pl
from jax.experimental.pallas import tpu as pltpu


def _round_up(x, m):
    return (x + m - 1) // m * m


def _cdiv(a, b):
    return (a + b - 1) // b


def _vmem_capacity_bytes():
    """Physical VMEM per core; conservative 64 MiB (v7x) fallback off-TPU."""
    try:
        info = pltpu.get_tpu_info()
        cap = getattr(info, "vmem_capacity_bytes", None)
        if cap:
            return int(cap)
    except Exception:
        pass
    return 64 << 20


def _triplet_kernel(a_ref, p_ref, n_ref, out_ref, sum_p_ref, sum_n_ref,
                    *, metric_type, margin_pos, margin_neg,
                    true_b, true_d, block_b, block_d, acc_w,
                    mask_rows, mask_cols):
    """Grid = (batch_blocks, feature_blocks).

    Accumulates lane-dense per-row partial sums over the feature axis in VMEM
    scratch; on the last feature step reduces cross-lane, applies margins and
    writes the per-batch-block partial sums of (loss, d_pos, d_neg) into lanes
    0..2 of a single (1, 1, 128) output block.
    """
    # NOTE: program_id must be read at the top level of the kernel body (not
    # inside pl.when bodies) — that was the cause of the previous lowering error.
    bi = pl.program_id(0)
    di = pl.program_id(1)
    last_d = pl.num_programs(1) - 1

    @pl.when(di == 0)
    def _init():
        sum_p_ref[...] = jnp.zeros_like(sum_p_ref)
        sum_n_ref[...] = jnp.zeros_like(sum_n_ref)

    a = a_ref[...].astype(jnp.float32)
    p = p_ref[...].astype(jnp.float32)
    n = n_ref[...].astype(jnp.float32)

    if metric_type == 'L2':                    # F.mse_loss(reduction='none')
        ep = (a - p) * (a - p)
        en = (a - n) * (a - n)
    else:                                      # 'L1' -> F.l1_loss(reduction='none')
        ep = jnp.abs(a - p)
        en = jnp.abs(a - n)

    if mask_cols:
        # Ragged feature edge: padded block contents are undefined -> select, not mul.
        col = di * block_d + lax.broadcasted_iota(jnp.int32, (1, block_d), 1)
        cvalid = col < true_d
        ep = jnp.where(cvalid, ep, 0.0)
        en = jnp.where(cvalid, en, 0.0)

    # Lane-dense accumulation: fold the feature tile into acc_w lanes using only
    # VPU adds over static 128-lane slices (no per-step cross-lane reduce).
    def fold(x):
        acc = x[:, 0:acc_w]
        for j in range(1, block_d // acc_w):
            acc = acc + x[:, j * acc_w:(j + 1) * acc_w]
        return acc

    sum_p_ref[...] += fold(ep)
    sum_n_ref[...] += fold(en)

    @pl.when(di == last_d)
    def _finalize():
        inv_d = jnp.float32(1.0 / true_d)
        d_pos = jnp.sum(sum_p_ref[...], axis=1, keepdims=True) * inv_d   # (block_b, 1)
        d_neg = jnp.sum(sum_n_ref[...], axis=1, keepdims=True) * inv_d
        loss = (jnp.maximum(d_pos, jnp.float32(margin_pos))
                - jnp.minimum(d_neg, jnp.float32(margin_neg)))
        if mask_rows:
            row = bi * block_b + lax.broadcasted_iota(jnp.int32, (block_b, 1), 0)
            rvalid = row < true_b
            loss = jnp.where(rvalid, loss, 0.0)
            d_pos = jnp.where(rvalid, d_pos, 0.0)
            d_neg = jnp.where(rvalid, d_neg, 0.0)
        loss_s = jnp.sum(loss)
        dpos_s = jnp.sum(d_pos)
        dneg_s = jnp.sum(d_neg)
        lane = lax.broadcasted_iota(jnp.int32, (1, 1, 128), 2)
        out_ref[...] = (jnp.where(lane == 0, loss_s, 0.0)
                        + jnp.where(lane == 1, dpos_s, 0.0)
                        + jnp.where(lane == 2, dneg_s, 0.0))


def triplet_loss(anchor, pos, neg, *, weight=1.0, margin_pos=0.1, margin_neg=1.0,
                 metric_type='L2', max_tile_bytes=None):
    assert metric_type in ('L1', 'L2')
    assert anchor.ndim == 2 and anchor.shape == pos.shape == neg.shape
    B, D = anchor.shape
    itemsize = jnp.dtype(anchor.dtype).itemsize

    vmem_cap = _vmem_capacity_bytes()
    if max_tile_bytes is None:
        # ~4 MiB/input on 64 MiB (v7x), up to 8 MiB on 128 MiB (v5e/v6e).
        max_tile_bytes = int(min(8 << 20, max(2 << 20, vmem_cap // 16)))

    lane = 128
    row_align = max(8, 32 // itemsize)     # sublane packing: 8 f32, 16 bf16, 32 int8

    # ---- feature (reduction) tiling: keep full D unless budget / unroll cap hit ----
    if D <= lane:
        block_d = D                        # full-dim block (allowed even if <128)
    else:
        col_budget = max(lane,
                         (max_tile_bytes // (row_align * itemsize)) // lane * lane)
        col_budget = min(col_budget, 64 * lane)          # bound lane-fold unroll
        block_d = min((D // lane) * lane, col_budget)    # multiple of 128, <= D
    grid_d = _cdiv(D, block_d)

    # ---- batch tiling ----
    rows_budget = max(row_align,
                      (max_tile_bytes // (block_d * itemsize)) // row_align * row_align)
    b_cap = B if B < row_align else (B // row_align) * row_align
    block_b = min(rows_budget, b_cap)
    # Guarantee >= 2 batch blocks when possible so v7x megacore shards the axis.
    if _cdiv(B, block_b) < 2 and block_b > row_align:
        block_b = _round_up((block_b + 1) // 2, row_align)
    grid_b = _cdiv(B, block_b)
    grid = (grid_b, grid_d)
    acc_w = min(lane, block_d)

    kernel = functools.partial(
        _triplet_kernel, metric_type=metric_type,
        margin_pos=float(margin_pos), margin_neg=float(margin_neg),
        true_b=B, true_d=D, block_b=block_b, block_d=block_d, acc_w=acc_w,
        mask_rows=(B % block_b != 0), mask_cols=(D % block_d != 0))

    in_spec = pl.BlockSpec((block_b, block_d), lambda bi, di: (bi, di))
    out_spec = pl.BlockSpec((1, 1, lane), lambda bi, di: (bi, 0, 0))

    tile_bytes = block_b * block_d * itemsize
    need = 3 * 2 * tile_bytes + 2 * block_b * acc_w * 4 + (1 << 20)
    vmem_limit = int(max(need + (2 << 20),
                         min(vmem_cap - (8 << 20),
                             max(32 << 20, need + need // 2))))

    cost = pl.CostEstimate(
        flops=8 * B * D,
        transcendentals=0,
        bytes_accessed=3 * B * D * itemsize + grid_b * lane * 4)

    parts = pl.pallas_call(
        kernel,
        out_shape=jax.ShapeDtypeStruct((grid_b, 1, lane), jnp.float32),
        grid=grid,
        in_specs=[in_spec, in_spec, in_spec],
        out_specs=out_spec,
        scratch_shapes=[pltpu.VMEM((block_b, acc_w), jnp.float32),
                        pltpu.VMEM((block_b, acc_w), jnp.float32)],
        compiler_params=pltpu.CompilerParams(
            dimension_semantics=("parallel", "arbitrary"),
            vmem_limit_bytes=vmem_limit),
        cost_estimate=cost,
    )(anchor, pos, neg)

    sums = jnp.sum(parts, axis=(0, 1))          # (128,)  lanes 0..2 hold the partials
    inv_b = jnp.float32(1.0 / B)
    loss_cvg = sums[0] * inv_b
    d_pos = sums[1] * inv_b
    d_neg = sums[2] * inv_b
    return weight * loss_cvg, (loss_cvg, d_pos, d_neg)


def _reference(anchor, pos, neg, weight, margin_pos, margin_neg, metric_type='L2'):
    a = anchor.astype(jnp.float32)
    p = pos.astype(jnp.float32)
    n = neg.astype(jnp.float32)
    if metric_type == 'L2':
        d_pos = jnp.mean((a - p) ** 2, axis=1)
        d_neg = jnp.mean((a - n) ** 2, axis=1)
    else:
        d_pos = jnp.mean(jnp.abs(a - p), axis=1)
        d_neg = jnp.mean(jnp.abs(a - n), axis=1)
    loss_cvg = jnp.maximum(d_pos, margin_pos) - jnp.minimum(d_neg, margin_neg)
    return (weight * loss_cvg.mean(),
            (loss_cvg.mean(), d_pos.mean(), d_neg.mean()))


if __name__ == "__main__":
    # Module __init__ defaults: weight=1.0, margin_pos=0.1, margin_neg=1.0.
    weight, margin_pos, margin_neg = 1.0, 0.1, 1.0
    k1, k2, k3, k4, k5, k6 = jax.random.split(jax.random.PRNGKey(0), 6)

    # ---- case 1: aligned shapes, L2; batch axis split into >=2 parallel blocks ----
    B, D = 16, 128
    anchor = jax.random.normal(k1, (B, D), dtype=jnp.float32)
    pos = anchor + 0.05 * jax.random.normal(k2, (B, D), dtype=jnp.float32)
    neg = jax.random.normal(k3, (B, D), dtype=jnp.float32)

    out = triplet_loss(anchor, pos, neg, weight=weight,
                       margin_pos=margin_pos, margin_neg=margin_neg,
                       metric_type='L2')
    jax.block_until_ready(out)
    ref = _reference(anchor, pos, neg, weight, margin_pos, margin_neg, 'L2')
    got = jnp.array([out[0], out[1][0], out[1][1], out[1][2]])
    want = jnp.array([ref[0], ref[1][0], ref[1][1], ref[1][2]])
    assert jnp.allclose(got, want, rtol=1e-5, atol=1e-5), (got, want)

    # ---- case 2: unaligned shapes (row + column masks, feature-axis accumulation), L1 ----
    B2, D2 = 20, 200
    anchor2 = jax.random.normal(k4, (B2, D2), dtype=jnp.float32)
    pos2 = anchor2 + 0.1 * jax.random.normal(k5, (B2, D2), dtype=jnp.float32)
    neg2 = jax.random.normal(k6, (B2, D2), dtype=jnp.float32)

    out2 = triplet_loss(anchor2, pos2, neg2, weight=weight,
                        margin_pos=margin_pos, margin_neg=margin_neg,
                        metric_type='L1', max_tile_bytes=4096)  # force 2-D grid
    jax.block_until_ready(out2)
    ref2 = _reference(anchor2, pos2, neg2, weight, margin_pos, margin_neg, 'L1')
    got2 = jnp.array([out2[0], out2[1][0], out2[1][1], out2[1][2]])
    want2 = jnp.array([ref2[0], ref2[1][0], ref2[1][1], ref2[1][2]])
    assert jnp.allclose(got2, want2, rtol=1e-5, atol=1e-5), (got2, want2)

    print("KERNEL_OK")
</pallas_src>

<mosaic_0001>
module attributes {stable_mosaic.version = 11 : i64} {
  func.func @_triplet_kernel(%arg0: i32, %arg1: i32, %arg2: memref<8x128xf32, #tpu.memory_space<vmem>>, %arg3: memref<8x128xf32, #tpu.memory_space<vmem>>, %arg4: memref<8x128xf32, #tpu.memory_space<vmem>>, %arg5: memref<1x1x128xf32, #tpu.memory_space<vmem>>, %arg6: memref<8x128xf32, #tpu.memory_space<vmem>>, %arg7: memref<8x128xf32, #tpu.memory_space<vmem>>) attributes {dimension_semantics = [#tpu.dimension_semantics<parallel>, #tpu.dimension_semantics<arbitrary>], iteration_bounds = array<i64: 2, 1>, scalar_prefetch = 0 : i64, scratch_operands = 2 : i64, tpu.core_type = #tpu.core_type<tc>, window_params = [{transform_indices = @transform_0, window_bounds = array<i64: 8, 128>}, {transform_indices = @transform_1, window_bounds = array<i64: 8, 128>}, {transform_indices = @transform_2, window_bounds = array<i64: 8, 128>}, {transform_indices = @transform_3, window_bounds = array<i64: 1, 1, 128>}]} {
    %c0_i32 = arith.constant 0 : i32
    %0 = arith.cmpi eq, %arg1, %c0_i32 : i32
    %1 = arith.extui %0 : i1 to i32
    %c0_i32_0 = arith.constant 0 : i32
    %2 = arith.cmpi ne, %1, %c0_i32_0 : i32
    scf.if %2 {
      %cst = arith.constant 0.000000e+00 : f32
      %21 = vector.broadcast %cst : f32 to vector<8x128xf32>
      %c0_16 = arith.constant 0 : index
      %c0_17 = arith.constant 0 : index
      %22 = vector.load %arg6[%c0_16, %c0_17] : memref<8x128xf32, #tpu.memory_space<vmem>>, vector<8x128xf32>
      tpu.vector_store %arg6[%c0_16, %c0_17], %21 {strides = array<i32>} : memref<8x128xf32, #tpu.memory_space<vmem>>, vector<8x128xf32>,
      %cst_18 = arith.constant 0.000000e+00 : f32
      %23 = vector.broadcast %cst_18 : f32 to vector<8x128xf32>
      %c0_19 = arith.constant 0 : index
      %c0_20 = arith.constant 0 : index
      %24 = vector.load %arg7[%c0_19, %c0_20] : memref<8x128xf32, #tpu.memory_space<vmem>>, vector<8x128xf32>
      tpu.vector_store %arg7[%c0_19, %c0_20], %23 {strides = array<i32>} : memref<8x128xf32, #tpu.memory_space<vmem>>, vector<8x128xf32>,
    } else {
    }
    %c0 = arith.constant 0 : index
    %c0_1 = arith.constant 0 : index
    %3 = vector.load %arg2[%c0, %c0_1] : memref<8x128xf32, #tpu.memory_space<vmem>>, vector<8x128xf32>
    %c0_2 = arith.constant 0 : index
    %c0_3 = arith.constant 0 : index
    %4 = vector.load %arg3[%c0_2, %c0_3] : memref<8x128xf32, #tpu.memory_space<vmem>>, vector<8x128xf32>
    %c0_4 = arith.constant 0 : index
    %c0_5 = arith.constant 0 : index
    %5 = vector.load %arg4[%c0_4, %c0_5] : memref<8x128xf32, #tpu.memory_space<vmem>>, vector<8x128xf32>
    %6 = arith.subf %3, %4 : vector<8x128xf32>
    %7 = arith.subf %3, %4 : vector<8x128xf32>
    %8 = arith.mulf %6, %7 : vector<8x128xf32>
    %9 = arith.subf %3, %5 : vector<8x128xf32>
    %10 = arith.subf %3, %5 : vector<8x128xf32>
    %11 = arith.mulf %9, %10 : vector<8x128xf32>
    %c0_6 = arith.constant 0 : index
    %c0_7 = arith.constant 0 : index
    %12 = vector.load %arg6[%c0_6, %c0_7] : memref<8x128xf32, #tpu.memory_space<vmem>>, vector<8x128xf32>
    %13 = arith.addf %12, %8 : vector<8x128xf32>
    %c0_8 = arith.constant 0 : index
    %c0_9 = arith.constant 0 : index
    %14 = vector.load %arg6[%c0_8, %c0_9] : memref<8x128xf32, #tpu.memory_space<vmem>>, vector<8x128xf32>
    tpu.vector_store %arg6[%c0_8, %c0_9], %13 {strides = array<i32>} : memref<8x128xf32, #tpu.memory_space<vmem>>, vector<8x128xf32>,
    %c0_10 = arith.constant 0 : index
    %c0_11 = arith.constant 0 : index
    %15 = vector.load %arg7[%c0_10, %c0_11] : memref<8x128xf32, #tpu.memory_space<vmem>>, vector<8x128xf32>
    %16 = arith.addf %15, %11 : vector<8x128xf32>
    %c0_12 = arith.constant 0 : index
    %c0_13 = arith.constant 0 : index
    %17 = vector.load %arg7[%c0_12, %c0_13] : memref<8x128xf32, #tpu.memory_space<vmem>>, vector<8x128xf32>
    tpu.vector_store %arg7[%c0_12, %c0_13], %16 {strides = array<i32>} : memref<8x128xf32, #tpu.memory_space<vmem>>, vector<8x128xf32>,
    %c0_i32_14 = arith.constant 0 : i32
    %18 = arith.cmpi eq, %arg1, %c0_i32_14 : i32
    %19 = arith.extui %18 : i1 to i32
    %c0_i32_15 = arith.constant 0 : i32
    %20 = arith.cmpi ne, %19, %c0_i32_15 : i32
    scf.if %20 {
      %c0_16 = arith.constant 0 : index
      %c0_17 = arith.constant 0 : index
      %21 = vector.load %arg6[%c0_16, %c0_17] : memref<8x128xf32, #tpu.memory_space<vmem>>, vector<8x128xf32>
      %cst = arith.constant dense<0.000000e+00> : vector<8xf32>
      %22 = vector.multi_reduction <add>, %21, %cst [1] : vector<8x128xf32> to vector<8xf32>
      %23 = vector.shape_cast %22 : vector<8xf32> to vector<8x1xf32>
      %cst_18 = arith.constant 7.812500e-03 : f32
      %24 = vector.broadcast %cst_18 : f32 to vector<8x1xf32>
      %25 = arith.mulf %23, %24 : vector<8x1xf32>
      %c0_19 = arith.constant 0 : index
      %c0_20 = arith.constant 0 : index
      %26 = vector.load %arg7[%c0_19, %c0_20] : memref<8x128xf32, #tpu.memory_space<vmem>>, vector<8x128xf32>
      %cst_21 = arith.constant dense<0.000000e+00> : vector<8xf32>
      %27 = vector.multi_reduction <add>, %26, %cst_21 [1] : vector<8x128xf32> to vector<8xf32>
      %28 = vector.shape_cast %27 : vector<8xf32> to vector<8x1xf32>
      %cst_22 = arith.constant 7.812500e-03 : f32
      %29 = vector.broadcast %cst_22 : f32 to vector<8x1xf32>
      %30 = arith.mulf %28, %29 : vector<8x1xf32>
      %cst_23 = arith.constant 1.000000e-01 : f32
      %31 = vector.broadcast %cst_23 : f32 to vector<8x1xf32>
      %32 = arith.maximumf %25, %31 : vector<8x1xf32>
      %cst_24 = arith.constant 1.000000e+00 : f32
      %33 = vector.broadcast %cst_24 : f32 to vector<8x1xf32>
      %34 = arith.minimumf %30, %33 : vector<8x1xf32>
      %35 = arith.subf %32, %34 : vector<8x1xf32>
      %36 = vector.shape_cast %35 : vector<8x1xf32> to vector<1x8x1xf32>
      %cst_25 = arith.constant dense<0.000000e+00> : vector<1xf32>
      %37 = vector.multi_reduction <add>, %36, %cst_25 [1, 2] : vector<1x8x1xf32> to vector<1xf32>
      %38 = vector.shape_cast %37 : vector<1xf32> to vector<1x1x1xf32>
      %39 = vector.extract %38[0, 0, 0] : f32 from vector<1x1x1xf32>
      %40 = vector.shape_cast %25 : vector<8x1xf32> to vector<1x8x1xf32>
      %cst_26 = arith.constant dense<0.000000e+00> : vector<1xf32>
      %41 = vector.multi_reduction <add>, %40, %cst_26 [1, 2] : vector<1x8x1xf32> to vector<1xf32>
      %42 = vector.shape_cast %41 : vector<1xf32> to vector<1x1x1xf32>
      %43 = vector.extract %42[0, 0, 0] : f32 from vector<1x1x1xf32>
      %44 = vector.shape_cast %30 : vector<8x1xf32> to vector<1x8x1xf32>
      %cst_27 = arith.constant dense<0.000000e+00> : vector<1xf32>
      %45 = vector.multi_reduction <add>, %44, %cst_27 [1, 2] : vector<1x8x1xf32> to vector<1xf32>
      %46 = vector.shape_cast %45 : vector<1xf32> to vector<1x1x1xf32>
      %47 = vector.extract %46[0, 0, 0] : f32 from vector<1x1x1xf32>
      %48 = tpu.iota {dimensions = array<i32: 2>} : vector<1x1x128xi32>
      %c0_i32_28 = arith.constant 0 : i32
      %49 = vector.broadcast %c0_i32_28 : i32 to vector<1x1x128xi32>
      %50 = arith.cmpi eq, %48, %49 : vector<1x1x128xi32>
      %cst_29 = arith.constant 0.000000e+00 : f32
      %51 = vector.broadcast %39 : f32 to vector<1x1x128xf32>
      %52 = vector.broadcast %cst_29 : f32 to vector<1x1x128xf32>
      %53 = arith.select %50, %51, %52 : vector<1x1x128xi1>, vector<1x1x128xf32>
      %c1_i32 = arith.constant 1 : i32
      %54 = vector.broadcast %c1_i32 : i32 to vector<1x1x128xi32>
      %55 = arith.cmpi eq, %48, %54 : vector<1x1x128xi32>
      %cst_30 = arith.constant 0.000000e+00 : f32
      %56 = vector.broadcast %43 : f32 to vector<1x1x128xf32>
      %57 = vector.broadcast %cst_30 : f32 to vector<1x1x128xf32>
      %58 = arith.select %55, %56, %57 : vector<1x1x128xi1>, vector<1x1x128xf32>
      %59 = arith.addf %53, %58 : vector<1x1x128xf32>
      %c2_i32 = arith.constant 2 : i32
      %60 = vector.broadcast %c2_i32 : i32 to vector<1x1x128xi32>
      %61 = arith.cmpi eq, %48, %60 : vector<1x1x128xi32>
      %cst_31 = arith.constant 0.000000e+00 : f32
      %62 = vector.broadcast %47 : f32 to vector<1x1x128xf32>
      %63 = vector.broadcast %cst_31 : f32 to vector<1x1x128xf32>
      %64 = arith.select %61, %62, %63 : vector<1x1x128xi1>, vector<1x1x128xf32>
      %65 = arith.addf %59, %64 : vector<1x1x128xf32>
      %c0_32 = arith.constant 0 : index
      %c0_33 = arith.constant 0 : index
      %c0_34 = arith.constant 0 : index
      %66 = vector.load %arg5[%c0_32, %c0_33, %c0_34] : memref<1x1x128xf32, #tpu.memory_space<vmem>>, vector<1x1x128xf32>
      tpu.vector_store %arg5[%c0_32, %c0_33, %c0_34], %65 {strides = array<i32>} : memref<1x1x128xf32, #tpu.memory_space<vmem>>, vector<1x1x128xf32>,
    } else {
    }
    return
  }
  func.func @transform_0(%arg0: i32, %arg1: i32) -> (i32, i32) {
    %c0_i32 = arith.constant 0 : i32
    return %arg0, %arg1 : i32, i32
  }
  func.func @transform_1(%arg0: i32, %arg1: i32) -> (i32, i32) {
    %c0_i32 = arith.constant 0 : i32
    return %arg0, %arg1 : i32, i32
  }
  func.func @transform_2(%arg0: i32, %arg1: i32) -> (i32, i32) {
    %c0_i32 = arith.constant 0 : i32
    return %arg0, %arg1 : i32, i32
  }
  func.func @transform_3(%arg0: i32, %arg1: i32) -> (i32, i32, i32) {
    %c0_i32 = arith.constant 0 : i32
    %c0_i32_0 = arith.constant 0 : i32
    %c0_i32_1 = arith.constant 0 : i32
    return %arg0, %c0_i32, %c0_i32_0 : i32, i32, i32
  }
}

</mosaic_0001>

<bundles_post_ra>
// kernel: tpu_custom_call.1
= control target key start
LH: loop header
LB: loop body
LE: loop exit
PB: predicated region body
PF: predicated region fallthrough
CT: control target
= control target key end

     0   :  { %s939_s0 = inlined_call_operand.hbm [shape: f32[16,128], index: 0, kind: input, shape index: {}]   ;;  %s940_s1 = inlined_call_operand.hbm [shape: f32[16,128], index: 1, kind: input, shape index: {}]   ;;  %s941_s2 = inlined_call_operand.hbm [shape: f32[16,128], index: 2, kind: input, shape index: {}]   ;;  %s942_s3 = inlined_call_operand.hbm [shape: f32[2,1,128], index: 3, kind: output, shape index: {}]  }
   0x1   :  { %945 = sst [smem:[#allocation17_spill]] %s940_s1 }
   0x2   :  { %8 = vsyncpa [#allocation5], 0 }
   0x3   :  { %10 = vsyncpa [#allocation5 + $0x1], 0 }
   0x4   :  { %11 = vsyncpa [#allocation8], 0 }
   0x5   :  { %13 = vsyncpa [#allocation8 + $0x1], 0 }
   0x6   :  { %14 = vsyncpa [#allocation6], 0 }
   0x7   :  { %16 = vsyncpa [#allocation6 + $0x1], 0  ;;  %s786_s12 = smov 0   ;;  %s788_s13 = smov 0  }
   0x8   :  { %s790_s14 = smov 0   ;;  %s792_s15 = smov 0  }
   0x9   :  { %s794_s16 = smov 0   ;;  %s796_s17 = smov 0  }
   0xa LB: > { %946 = sst [smem:[#allocation14_spill]] %s760_s16  ;;  %s817_s18 = sadd.s32 4294967295, %s764_s17   ;;  %s764_s17 = sphi %s796_s17, %s22_s17   ;;  %s760_s16 = sphi %s794_s16, %s958_s16   ;;  %s756_s15 = sphi %s792_s15, %s957_s15   ;;  %s752_s14 = sphi %s790_s14, %s961_s14   ;;  %s748_s13 = sphi %s788_s13, %s960_s13   ;;  %s744_s12 = sphi %s786_s12, %s959_s12  }
   0xb   : > { %s495_s19 = sadd.s32 4294967294, %s764_s17   ;;  %s34_s20 = sadd.s32 1, %s760_s16 }
   0xc   : > { %s43_s21 = sadd.s32 1, %s752_s14  ;;  %p36_p0 = scmp.ge.s32.totalorder %s34_s20, 2 }
   0xd   : > { %p50_p1 = scmp.ne.s32.totalorder %s752_s14, %s748_s13  ;;  %p51_p2 = scmp.eq.s32.totalorder %s764_s17, 0 }
   0xe   : > { %p56_p3 = scmp.ne.s32.totalorder %s748_s13, %s744_s12  ;;  %s963_s20 = smov (%p36_p0, %s34_s20), 0 }
   0xf   : > { %947 = sst [smem:[#allocation15_spill]] %s963_s20  ;;  %p829_p4 = por %p51_p2, %p50_p1 }
  0x10   : > { %p57_p5 = scmp.eq.s32.totalorder %s817_s18, 0  ;;  %s38_s23 = ssub.s32 %s760_s16, %s963_s20 }
  0x11   : > { %p136_p6 = scmp.eq.s32.totalorder %s817_s18, 1  ;;  %p41_p7 = scmp.eq.s32.totalorder %s38_s23, 0 }
  0x12   : > { %p837_p8 = por %p57_p5, %p56_p3  ;;  %p142_p10 = scmp.eq.s32.totalorder %s495_s19, 1 }
  0x13   : > { %p841_p9 = por %p136_p6, %p50_p1  ;;  %p497_p12 = scmp.ge.s32.totalorder %s764_s17, 2 }
  0x14   : > { %s846_s26 = scalar_select %p41_p7, %s752_s14, %s43_s21  }
  0x15   : > { %p848_p11 = por %p142_p10, %p56_p3  ;;  %p538_p13 = scmp.lt.s32.totalorder %s764_s17, 2 }
  0x16   : > { %951 = sst [smem:[#allocation16_spill]] %s846_s26  ;;  %s162_s28 = sand.u32 1, %s752_s14  }
  0x17   : > { %s498_s29 = sshll.u32 %s162_s28, 3  ;;  %s499_s30 = sshll.u32 %s760_s16, 3 }
  0x18   : > { %p858_p0 = pnand %p538_p13, %p829_p4  ;;  %s182_s5 = sand.u32 1, %s764_s17  }
  0x19   : > { %s954_s1 = sld [smem:[#allocation17_spill]]  ;;  %s186_s10 = scalar_lea.vmem [#allocation7], %s498_s29 }
  0x1a   : > { %s195_s11 = sshll.u32 %s186_s10, 4  ;;  %s183_s19 = scalar_lea.sflag [#allocation8], %s182_s5  ;;  %s196_s11 = int_to_ptr.vmem [resolvable:$true] %s195_s11 }
  0x1b   : > { %p504_p1 = scmp.ge.s32.totalorder %s764_s17, 1  ;;  %p220_p2 = scmp.lt.s32.totalorder %s764_s17, 3 }
  0x1c   : > { %s171_s6 = scalar_lea.hbm %s939_s0, %s499_s30  ;;  %s163_s10 = scalar_lea.sflag [#allocation5], %s162_s28 }
  0x1d   : > { %p870_p3 = pnand %p504_p1, %p220_p2  ;;  %s173_s7 = sshll.u32 %s171_s6, 4  ;;  %s174_s7 = int_to_ptr.hbm [resolvable:$true] %s173_s7 }
  0x1e   : > { %s206_s16 = scalar_lea.vmem [#allocation9], %s498_s29  ;;  %s887_s22 = sand.u32 (!%p870_p3), 1, %s748_s13  }
  0x1f   : > { %s191_s8 = scalar_lea.hbm %s954_s1, %s499_s30  ;;  %s215_s26 = sshll.u32 %s206_s16, 4  ;;  %s216_s26 = int_to_ptr.vmem [resolvable:$true] %s215_s26 }
  0x20   : > { %s193_s9 = sshll.u32 %s191_s8, 4  ;;  %s166_s8 = scalar_lea.vmem [#allocation4], %s498_s29  ;;  %s194_s9 = int_to_ptr.hbm [resolvable:$true] %s193_s9 }
  0x21   : > { %530 = dma.hbm_to_vmem [thread:$0]  (!%p858_p0), %s194_s9, 128, %s196_s11, %s183_s19  }
  0x22   : > { %s175_s1 = sshll.u32 %s166_s8, 4  ;;  %s211_s11 = scalar_lea.hbm %s941_s2, %s499_s30  ;;  %s176_s1 = int_to_ptr.vmem [resolvable:$true] %s175_s1 }
  0x23   : > { %527 = dma.hbm_to_vmem [thread:$0]  (!%p858_p0), %s174_s7, 128, %s176_s1, %s163_s10  }
  0x24   : > { %s213_s20 = sshll.u32 %s211_s11, 4  ;;  %224 = sbr.rel (%p870_p3) target bundleno = 376 (0x178), region = 32  ;;  %s214_s20 = int_to_ptr.hbm [resolvable:$true] %s213_s20 }
  0x25   : > { %533 = dma.hbm_to_vmem [thread:$0]  (!%p858_p0), %s214_s20, 128, %s216_s26, %s183_s19  }
  0x26   : > { %s505_s1 = sshll.u32 (!%p870_p3), %s887_s22, 3  ;;  %s227_s28 = scalar_lea.sflag (!%p870_p3), [#allocation5], %s887_s22 }
  0x27   : > { %s230_s23 = scalar_lea.vmem (!%p870_p3), [#allocation4], %s505_s1 }
  0x29   : > { %731 = dma.done.wait (%p837_p8), %s227_s28, 128  }
  0x2a   : > { %733 = vsyncadd (%p837_p8), %s227_s28, 4294967168  ;;  %s236_s16 = sand.u32 1, %s817_s18   ;;  %s240_s26 = scalar_lea.vmem [#allocation7], %s505_s1 }
  0x2b   : > { %s237_s20 = scalar_lea.sflag [#allocation8], %s236_s16 }
  0x2c   : > { %735 = dma.done.wait (%p837_p8), %s237_s20, 256  }
  0x2d   : > { %737 = vsyncadd (%p837_p8), %s237_s20, 4294967040  ;;  %v289_v0 = vld [vmem:[%s230_s23] sm:$0xff]  ;;  %v290_v1 = vld [vmem:[%s240_s26] sm:$0xff]  ;;  %s250_s29 = scalar_lea.vmem [#allocation9], %s505_s1  ;;  %vm316_vm0 = vcmask 7168   ;;  %v347_v38 = vlaneseq  ;;  %s370_s4 = scalar_lea.hbm %s942_s3, %s756_s15 }
  0x2e   : > { %v292_v2 = vsub.f32 %v289_v0, %v290_v1  ;;  %v291_v3 = vld [vmem:[%s250_s29] sm:$0xff]  ;;  %s282_s6 = scalar_lea.vmem [#allocation10], %s887_s22  ;;  %s374_s8 = sshll.u32 %s370_s4, 4  ;;  %s375_s8 = int_to_ptr.hbm [resolvable:$true] %s374_s8 }
  0x2f   : > { %v294_v5 = vsub.f32 %v289_v0, %v291_v3  ;;  %v348_v39 = vand.u32 127, %v347_v38  ;;  %s372_s7 = sshll.u32 %s282_s6, 4  ;;  %s362_s10 = scalar_lea.sflag [#allocation6], %s887_s22  ;;  %s373_s7 = int_to_ptr.vmem [resolvable:$true] %s372_s7 }
  0x30   : > { %v293_v4 = vmul.f32 %v292_v2, %v292_v2  ;;  %s692_s15 = sshra.s32 %s375_s8, 4  ;;  %s698_s1 = scalar_lea.hbm %s942_s3, 2  ;;  %s693_s15 = int_to_ptr.hbm [resolvable:$true] %s692_s15 }
  0x31   : > { %v295_v6 = vmul.f32 %v294_v5, %v294_v5  ;;  %vm349_vm1 = vcmp.eq.s32.totalorder %v348_v39, 0  ;;  %vm352_vm2 = vcmp.eq.s32.totalorder %v348_v39, 1  ;;  %vm356_vm3 = vcmp.eq.s32.totalorder %v348_v39, 2  ;;  %s694_s5 = scalar_lea.hbm %s693_s15, 1  ;;  %p699_p7 = scmp.lt.s32.totalorder %s693_s15, %s942_s3 }
  0x32   : > { %306 = vadd.xlane.f32.xlu0 %v293_v4  ;;  %p695_p4 = scmp.ne.s32.totalorder %s693_s15, %s694_s5  ;;  %p700_p8 = scmp.lt.s32.totalorder %s698_s1, %s694_s5 }
  0x34   : > { %p696_p5 = pnand %p695_p4, %p841_p9  ;;  %p701_p10 = por %p700_p8, %p699_p7 }
  0x36   : > { %p697_p6 = pneg %p696_p5 }
  0x38   : > { %p702_p13 = pnand %p701_p10, %p697_p6 }
  0x3a   : > { %310 = vadd.xlane.f32.xlu0 %v295_v6 }
  0xa5   : > { %v307_v7 = vpop.xlane.xlu0 %306 }
  0xa6   : > { %v308_v8 = vmul.f32 0.0078125, %v307_v7 }
  0xa8   : > { %v313_v11 = vmax.f32 %v308_v8, 0.1  ;;  %v327_v16 = vsel %vm316_vm0, %v308_v8, 0.0 }
  0xad   : > { %v311_v9 = vpop.xlane.xlu0 %310 }
  0xae   : > { %v312_v10 = vmul.f32 0.0078125, %v311_v9 }
  0xb0   : > { %v314_v12 = vmin.f32 %v312_v10, 1.0  ;;  %v337_v13 = vsel %vm316_vm0, %v312_v10, 0.0 }
  0xb1   : > { %338 = vadd.xlane.f32.xlu2 %v337_v13 }
  0xb2   : > { %v315_v14 = vsub.f32 %v313_v11, %v314_v12 }
  0xb4   : > { %v317_v15 = vsel %vm316_vm0, %v315_v14, 0.0 }
  0xb5   : > { %318 = vadd.xlane.f32.xlu1 %v317_v15 }
  0xbd   : > { %328 = vadd.xlane.f32.xlu1 %v327_v16 }
 0x124   : > { %v339_v17 = vpop.xlane.xlu2 %338 }
 0x125   : > { %v340_v18 = vrot.slane %v339_v17, 4 }
 0x127   : > { %v341_v22 = vadd.f32 %v340_v18, %v339_v17 }
 0x128   : > { %v319_v19 = vpop.xlane.xlu1 %318 }
 0x129   : > { %v320_v20 = vrot.slane %v319_v19, 4  ;;  %v342_v25 = vrot.slane %v341_v22, 2 }
 0x12b   : > { %v321_v21 = vadd.f32 %v320_v20, %v319_v19  ;;  %v343_v31 = vadd.f32 %v342_v25, %v341_v22 }
 0x12d   : > { %v322_v23 = vrot.slane %v321_v21, 2  ;;  %v344_v34 = vrot.slane %v343_v31, 1 }
 0x12f   : > { %v323_v24 = vadd.f32 %v322_v23, %v321_v21  ;;  %v345_v37 = vadd.f32 %v344_v34, %v343_v31 }
 0x130   : > { %v329_v26 = vpop.xlane.xlu1 %328 }
 0x131   : > { %v330_v27 = vrot.slane %v329_v26, 4  ;;  %v324_v28 = vrot.slane %v323_v24, 1 }
 0x133   : > { %v331_v29 = vadd.f32 %v330_v27, %v329_v26  ;;  %v325_v30 = vadd.f32 %v324_v28, %v323_v24 }
 0x135   : > { %v332_v32 = vrot.slane %v331_v29, 2  ;;  %510 = vpush %v325_v30 }
 0x137   : > { %v333_v33 = vadd.f32 %v332_v32, %v331_v29 }
 0x139   : > { %v334_v35 = vrot.slane %v333_v33, 1 }
 0x13b   : > { %v335_v36 = vadd.f32 %v334_v35, %v333_v33 }
 0x13d   : > { %512 = vpush %v335_v36 }
 0x13e   : > { %514 = vpush %v345_v37 }
 0x166   : > { %s511_s18 = spop %510 }
 0x167   : > { %v350_v40 = vstv %s511_s18 }
 0x168   : > { %v351_v42 = vsel %vm349_vm1, %v350_v40, 0.0 }
 0x16e   : > { %s513_s19 = spop %512 }
 0x16f   : > { %v353_v41 = vstv %s513_s19  ;;  %s515_s21 = spop %514 }
 0x170   : > { %v354_v43 = vsel %vm352_vm2, %v353_v41, 0.0  ;;  %v357_v44 = vstv %s515_s21 }
 0x171   : > { %v355_v45 = vadd.f32 %v354_v43, %v351_v42  ;;  %v358_v46 = vsel %vm356_vm3, %v357_v44, 0.0 }
 0x173   : > { %v359_v47 = vadd.f32 %v358_v46, %v355_v45 }
 0x175   : > { %360 = vst [vmem:[%s282_s6] sm:$0x1] %v359_v47 }
 0x176   : > { %705 = shalt.err (!%p702_p13)
}
 0x177   : > { %522 = dma.vmem_to_hbm [thread:$0]  (%p841_p9), %s373_s7, 16, %s375_s8, %s362_s10  }
 0x178 PF: > { %s386_s22 = sand.u32 1, %s744_s12   ;;  %p535_p0 = pnand %p497_p12, %p848_p11 }
 0x179   : > { %s387_s16 = scalar_lea.sflag [#allocation6], %s386_s22 }
 0x17a   : > { %p536_p1 = pneg %p535_p0 }
 0x17c   : > { %739 = dma.done.wait (%p536_p1), %s387_s16, 16  }
 0x17d   : > { %741 = vsyncadd (%p536_p1), %s387_s16, 4294967280  ;;  %s22_s17 = sadd.s32 1, %s764_s17   ;;  %s956_s20 = sld [smem:[#allocation16_spill]] }
 0x17e   : > { %p19_p2 = scmp.ge.s32.totalorder %s22_s17, 4   ;;  %s957_s15 = sld [smem:[#allocation14_spill]] }
 0x17f   : > { %s958_s16 = sld [smem:[#allocation15_spill]]  ;;  %s959_s12 = smov %s748_s13 }
 0x180   : > { %s960_s13 = smov %s752_s14  ;;  %21 = sbr.rel (!%p19_p2) target bundleno = 10 (0xa), region = 109 }
 0x183   : > { %s961_s14 = smov %s956_s20 }
 0x185   :  { %392 = vsyncpa [#allocation5], 1 }
 0x186   :  { %394 = vsyncpa [#allocation5 + $0x1], 1 }
 0x187   :  { %395 = vsyncpa [#allocation8], 1 }
 0x188   :  { %397 = vsyncpa [#allocation8 + $0x1], 1 }
 0x189   :  { %398 = vsyncpa [#allocation6], 1 }
 0x18a   :  { %400 = vsyncpa [#allocation6 + $0x1], 1 }

</bundles_post_ra>
